<compile_context>
chip_gen: v7x
topology: tpu7x:2x2x1
jax: 0.10.0
libtpu: 0.0.40
codegen_flags: <defaults>
</compile_context>

<pallas_src>
import jax
import jax.numpy as jnp
from jax.experimental import pallas as pl
from jax.experimental.pallas import tpu as pltpu

LOG_STD_MIN = -20.0
LOG_STD_MAX = 2.0
DROP_P = 0.5
HEAD_PAD = 128  # lane padding per head (mean / log_std)


def policy_kernel(s_ref, m_ref,
                  w1_ref, b1_ref,
                  w23_ref, b23_ref,
                  wh_ref, bh_ref,
                  mean_ref, logstd_ref):
    x = s_ref[...]

    # linear1 -> dropout -> relu   (fused: mask is already {0, 1/(1-p)} scaled)
    h = jnp.dot(x, w1_ref[...], preferred_element_type=jnp.float32) + b1_ref[...]
    h = jnp.maximum(h * m_ref[0], 0.0)

    # linear2 -> dropout -> relu
    h = jnp.dot(h, w23_ref[0], preferred_element_type=jnp.float32) + b23_ref[0]
    h = jnp.maximum(h * m_ref[1], 0.0)

    # linear3 -> relu
    h = jnp.dot(h, w23_ref[1], preferred_element_type=jnp.float32) + b23_ref[1]
    h = jnp.maximum(h, 0.0)

    # fused heads: one lane-dense matmul producing [mean | log_std] padded slabs
    heads = jnp.dot(h, wh_ref[...], preferred_element_type=jnp.float32) + bh_ref[...]
    mean_ref[...] = heads[:, :HEAD_PAD]
    logstd_ref[...] = jnp.clip(heads[:, HEAD_PAD:], LOG_STD_MIN, LOG_STD_MAX)


def dropout_mask(key, batch, hidden):
    """(2, B, H) mask of {0, 1/(1-p)} — one draw covers both dropout layers."""
    keep = jax.random.bernoulli(key, 1.0 - DROP_P, (2, batch, hidden))
    return keep.astype(jnp.float32) * (1.0 / (1.0 - DROP_P))


def pack_params(params):
    """Pack raw per-layer params into the kernel's fused/padded layout."""
    H = params["w1"].shape[1]
    A = params["wm"].shape[1]
    assert A <= HEAD_PAD

    w23 = jnp.stack([params["w2"], params["w3"]])        # (2, H, H)
    b23 = jnp.stack([params["b2"], params["b3"]])        # (2, 1, H)

    wh = jnp.zeros((H, 2 * HEAD_PAD), jnp.float32)
    wh = wh.at[:, :A].set(params["wm"])
    wh = wh.at[:, HEAD_PAD:HEAD_PAD + A].set(params["ws"])
    bh = jnp.zeros((1, 2 * HEAD_PAD), jnp.float32)
    bh = bh.at[:, :A].set(params["bm"])
    bh = bh.at[:, HEAD_PAD:HEAD_PAD + A].set(params["bs"])

    return dict(w1=params["w1"], b1=params["b1"],
                w23=w23, b23=b23, wh=wh, bh=bh, num_actions=A)


def policy_forward(state, packed, key):
    """state: (B, num_inputs) f32. Returns (mean, log_std), each (B, num_actions)."""
    B, NI = state.shape
    H = packed["w1"].shape[1]
    A = packed["num_actions"]

    mask = dropout_mask(key, B, H)

    # batch tiling: full batch if small, else 128-row tiles (sublane-aligned)
    TILE_B = B if B <= 128 else 128
    assert B % TILE_B == 0, "batch must be a multiple of the batch tile"
    grid = (B // TILE_B,)

    mean_pad, logstd_pad = pl.pallas_call(
        policy_kernel,
        out_shape=(jax.ShapeDtypeStruct((B, HEAD_PAD), jnp.float32),
                   jax.ShapeDtypeStruct((B, HEAD_PAD), jnp.float32)),
        grid=grid,
        in_specs=[
            pl.BlockSpec((TILE_B, NI), lambda i: (i, 0)),            # state
            pl.BlockSpec((2, TILE_B, H), lambda i: (0, i, 0)),       # dropout masks
            pl.BlockSpec((NI, H), lambda i: (0, 0)),                 # w1
            pl.BlockSpec((1, H), lambda i: (0, 0)),                  # b1
            pl.BlockSpec((2, H, H), lambda i: (0, 0, 0)),            # w2, w3
            pl.BlockSpec((2, 1, H), lambda i: (0, 0, 0)),            # b2, b3
            pl.BlockSpec((H, 2 * HEAD_PAD), lambda i: (0, 0)),       # fused head W
            pl.BlockSpec((1, 2 * HEAD_PAD), lambda i: (0, 0)),       # fused head b
        ],
        out_specs=(
            pl.BlockSpec((TILE_B, HEAD_PAD), lambda i: (i, 0)),      # mean (padded)
            pl.BlockSpec((TILE_B, HEAD_PAD), lambda i: (i, 0)),      # log_std (padded)
        ),
        compiler_params=pltpu.CompilerParams(
            dimension_semantics=("parallel",)),
    )(state, mask,
      packed["w1"], packed["b1"],
      packed["w23"], packed["b23"],
      packed["wh"], packed["bh"])

    return mean_pad[:, :A], logstd_pad[:, :A]


def init_params(key, num_inputs, num_actions, hidden_size, init_w=0.003):
    """Deterministic init mirroring nn.Linear defaults + custom head init.
    Weights are stored transposed: (in_features, out_features)."""
    ks = jax.random.split(key, 10)

    def linear(kw, kb, fan_in, fan_out):
        bound = 1.0 / jnp.sqrt(fan_in)
        w = jax.random.uniform(kw, (fan_in, fan_out), jnp.float32, -bound, bound)
        b = jax.random.uniform(kb, (1, fan_out), jnp.float32, -bound, bound)
        return w, b

    w1, b1 = linear(ks[0], ks[1], num_inputs, hidden_size)
    w2, b2 = linear(ks[2], ks[3], hidden_size, hidden_size)
    w3, b3 = linear(ks[4], ks[5], hidden_size, hidden_size)
    wm = jax.random.uniform(ks[6], (hidden_size, num_actions), jnp.float32, -init_w, init_w)
    bm = jax.random.uniform(ks[7], (1, num_actions), jnp.float32, -init_w, init_w)
    ws = jax.random.uniform(ks[8], (hidden_size, num_actions), jnp.float32, -init_w, init_w)
    bs = jax.random.uniform(ks[9], (1, num_actions), jnp.float32, -init_w, init_w)

    return dict(w1=w1, b1=b1, w2=w2, b2=b2, w3=w3, b3=b3,
                wm=wm, bm=bm, ws=ws, bs=bs)


def _ref_forward(state, params, mask):
    """Pure-JAX reference (same dropout mask) for correctness checking."""
    h = jnp.maximum((state @ params["w1"] + params["b1"]) * mask[0], 0.0)
    h = jnp.maximum((h @ params["w2"] + params["b2"]) * mask[1], 0.0)
    h = jnp.maximum(h @ params["w3"] + params["b3"], 0.0)
    mean = h @ params["wm"] + params["bm"]
    log_std = jnp.clip(h @ params["ws"] + params["bs"], LOG_STD_MIN, LOG_STD_MAX)
    return mean, log_std


if __name__ == "__main__":
    key = jax.random.PRNGKey(0)
    k_state, k_params, k_drop = jax.random.split(key, 3)

    batch = 8
    num_inputs = 16
    hidden_size = 32
    num_actions = 4

    state = jax.random.normal(k_state, (batch, num_inputs), jnp.float32)
    params = init_params(k_params, num_inputs, num_actions, hidden_size)
    packed = pack_params(params)

    mean, log_std = policy_forward(state, packed, k_drop)
    jax.block_until_ready((mean, log_std))

    assert mean.shape == (batch, num_actions)
    assert log_std.shape == (batch, num_actions)
    assert bool(jnp.all(log_std >= LOG_STD_MIN)) and bool(jnp.all(log_std <= LOG_STD_MAX))

    # correctness check vs. pure-JAX reference using the same dropout mask
    ref_mean, ref_log_std = _ref_forward(state, params,
                                         dropout_mask(k_drop, batch, hidden_size))
    assert bool(jnp.allclose(mean, ref_mean, rtol=1e-4, atol=1e-4))
    assert bool(jnp.allclose(log_std, ref_log_std, rtol=1e-4, atol=1e-4))

    print("KERNEL_OK")
</pallas_src>

<mosaic_0001>
module attributes {stable_mosaic.version = 11 : i64} {
  func.func @policy_kernel(%arg0: i32, %arg1: memref<8x16xf32, #tpu.memory_space<vmem>>, %arg2: memref<2x8x32xf32, #tpu.memory_space<vmem>>, %arg3: memref<16x32xf32, #tpu.memory_space<vmem>>, %arg4: memref<1x32xf32, #tpu.memory_space<vmem>>, %arg5: memref<2x32x32xf32, #tpu.memory_space<vmem>>, %arg6: memref<2x1x32xf32, #tpu.memory_space<vmem>>, %arg7: memref<32x256xf32, #tpu.memory_space<vmem>>, %arg8: memref<1x256xf32, #tpu.memory_space<vmem>>, %arg9: memref<8x128xf32, #tpu.memory_space<vmem>>, %arg10: memref<8x128xf32, #tpu.memory_space<vmem>>) attributes {dimension_semantics = [#tpu.dimension_semantics<parallel>], iteration_bounds = array<i64: 1>, scalar_prefetch = 0 : i64, scratch_operands = 0 : i64, tpu.core_type = #tpu.core_type<tc>, window_params = [{transform_indices = @transform_0, window_bounds = array<i64: 8, 16>}, {transform_indices = @transform_1, window_bounds = array<i64: 2, 8, 32>}, {pipeline_mode = #tpu.pipeline_mode<synchronous>, transform_indices = @transform_2, window_bounds = array<i64: 16, 32>}, {pipeline_mode = #tpu.pipeline_mode<synchronous>, transform_indices = @transform_3, window_bounds = array<i64: 1, 32>}, {pipeline_mode = #tpu.pipeline_mode<synchronous>, transform_indices = @transform_4, window_bounds = array<i64: 2, 32, 32>}, {pipeline_mode = #tpu.pipeline_mode<synchronous>, transform_indices = @transform_5, window_bounds = array<i64: 2, 1, 32>}, {pipeline_mode = #tpu.pipeline_mode<synchronous>, transform_indices = @transform_6, window_bounds = array<i64: 32, 256>}, {pipeline_mode = #tpu.pipeline_mode<synchronous>, transform_indices = @transform_7, window_bounds = array<i64: 1, 256>}, {transform_indices = @transform_8, window_bounds = array<i64: 8, 128>}, {transform_indices = @transform_9, window_bounds = array<i64: 8, 128>}]} {
    %c0 = arith.constant 0 : index
    %c0_0 = arith.constant 0 : index
    %0 = vector.load %arg1[%c0, %c0_0] : memref<8x16xf32, #tpu.memory_space<vmem>>, vector<8x16xf32>
    %c0_1 = arith.constant 0 : index
    %c0_2 = arith.constant 0 : index
    %1 = vector.load %arg3[%c0_1, %c0_2] : memref<16x32xf32, #tpu.memory_space<vmem>>, vector<16x32xf32>
    %cst = arith.constant dense<0.000000e+00> : vector<8x32xf32>
    %2 = tpu.matmul %0, %1, %cst {dimension_numbers = #tpu.dot_dimension_numbers<[1], [0], [0], [1], [0, 0, 1, 1], [], []>} : vector<8x16xf32>, vector<16x32xf32>, vector<8x32xf32> -> vector<8x32xf32>
    %c0_3 = arith.constant 0 : index
    %c0_4 = arith.constant 0 : index
    %3 = vector.load %arg4[%c0_3, %c0_4] : memref<1x32xf32, #tpu.memory_space<vmem>>, vector<1x32xf32>
    %4 = vector.broadcast %3 : vector<1x32xf32> to vector<8x32xf32>
    %5 = arith.addf %2, %4 : vector<8x32xf32>
    %c0_5 = arith.constant 0 : index
    %c0_6 = arith.constant 0 : index
    %c0_7 = arith.constant 0 : index
    %6 = vector.load %arg2[%c0_5, %c0_6, %c0_7] : memref<2x8x32xf32, #tpu.memory_space<vmem>>, vector<1x8x32xf32>
    %7 = vector.shape_cast %6 : vector<1x8x32xf32> to vector<8x32xf32>
    %8 = arith.mulf %5, %7 : vector<8x32xf32>
    %cst_8 = arith.constant 0.000000e+00 : f32
    %9 = vector.broadcast %cst_8 : f32 to vector<8x32xf32>
    %10 = arith.maximumf %8, %9 : vector<8x32xf32>
    %c0_9 = arith.constant 0 : index
    %c0_10 = arith.constant 0 : index
    %c0_11 = arith.constant 0 : index
    %11 = vector.load %arg5[%c0_9, %c0_10, %c0_11] : memref<2x32x32xf32, #tpu.memory_space<vmem>>, vector<1x32x32xf32>
    %12 = vector.shape_cast %11 : vector<1x32x32xf32> to vector<32x32xf32>
    %cst_12 = arith.constant dense<0.000000e+00> : vector<8x32xf32>
    %13 = tpu.matmul %10, %12, %cst_12 {dimension_numbers = #tpu.dot_dimension_numbers<[1], [0], [0], [1], [0, 0, 1, 1], [], []>} : vector<8x32xf32>, vector<32x32xf32>, vector<8x32xf32> -> vector<8x32xf32>
    %c0_13 = arith.constant 0 : index
    %c0_14 = arith.constant 0 : index
    %c0_15 = arith.constant 0 : index
    %14 = vector.load %arg6[%c0_13, %c0_14, %c0_15] : memref<2x1x32xf32, #tpu.memory_space<vmem>>, vector<1x1x32xf32>
    %15 = vector.shape_cast %14 : vector<1x1x32xf32> to vector<1x32xf32>
    %16 = vector.broadcast %15 : vector<1x32xf32> to vector<8x32xf32>
    %17 = arith.addf %13, %16 : vector<8x32xf32>
    %c1 = arith.constant 1 : index
    %c0_16 = arith.constant 0 : index
    %c0_17 = arith.constant 0 : index
    %18 = vector.load %arg2[%c1, %c0_16, %c0_17] : memref<2x8x32xf32, #tpu.memory_space<vmem>>, vector<1x8x32xf32>
    %19 = vector.shape_cast %18 : vector<1x8x32xf32> to vector<8x32xf32>
    %20 = arith.mulf %17, %19 : vector<8x32xf32>
    %cst_18 = arith.constant 0.000000e+00 : f32
    %21 = vector.broadcast %cst_18 : f32 to vector<8x32xf32>
    %22 = arith.maximumf %20, %21 : vector<8x32xf32>
    %c1_19 = arith.constant 1 : index
    %c0_20 = arith.constant 0 : index
    %c0_21 = arith.constant 0 : index
    %23 = vector.load %arg5[%c1_19, %c0_20, %c0_21] : memref<2x32x32xf32, #tpu.memory_space<vmem>>, vector<1x32x32xf32>
    %24 = vector.shape_cast %23 : vector<1x32x32xf32> to vector<32x32xf32>
    %cst_22 = arith.constant dense<0.000000e+00> : vector<8x32xf32>
    %25 = tpu.matmul %22, %24, %cst_22 {dimension_numbers = #tpu.dot_dimension_numbers<[1], [0], [0], [1], [0, 0, 1, 1], [], []>} : vector<8x32xf32>, vector<32x32xf32>, vector<8x32xf32> -> vector<8x32xf32>
    %c1_23 = arith.constant 1 : index
    %c0_24 = arith.constant 0 : index
    %c0_25 = arith.constant 0 : index
    %26 = vector.load %arg6[%c1_23, %c0_24, %c0_25] : memref<2x1x32xf32, #tpu.memory_space<vmem>>, vector<1x1x32xf32>
    %27 = vector.shape_cast %26 : vector<1x1x32xf32> to vector<1x32xf32>
    %28 = vector.broadcast %27 : vector<1x32xf32> to vector<8x32xf32>
    %29 = arith.addf %25, %28 : vector<8x32xf32>
    %cst_26 = arith.constant 0.000000e+00 : f32
    %30 = vector.broadcast %cst_26 : f32 to vector<8x32xf32>
    %31 = arith.maximumf %29, %30 : vector<8x32xf32>
    %c0_27 = arith.constant 0 : index
    %c0_28 = arith.constant 0 : index
    %32 = vector.load %arg7[%c0_27, %c0_28] : memref<32x256xf32, #tpu.memory_space<vmem>>, vector<32x256xf32>
    %cst_29 = arith.constant dense<0.000000e+00> : vector<8x256xf32>
    %33 = tpu.matmul %31, %32, %cst_29 {dimension_numbers = #tpu.dot_dimension_numbers<[1], [0], [0], [1], [0, 0, 1, 1], [], []>} : vector<8x32xf32>, vector<32x256xf32>, vector<8x256xf32> -> vector<8x256xf32>
    %c0_30 = arith.constant 0 : index
    %c0_31 = arith.constant 0 : index
    %34 = vector.load %arg8[%c0_30, %c0_31] : memref<1x256xf32, #tpu.memory_space<vmem>>, vector<1x256xf32>
    %35 = vector.broadcast %34 : vector<1x256xf32> to vector<8x256xf32>
    %36 = arith.addf %33, %35 : vector<8x256xf32>
    %37 = vector.extract_strided_slice %36 {offsets = [0, 0], sizes = [8, 128], strides = [1, 1]} : vector<8x256xf32> to vector<8x128xf32>
    %c0_32 = arith.constant 0 : index
    %c0_33 = arith.constant 0 : index
    %38 = vector.load %arg9[%c0_32, %c0_33] : memref<8x128xf32, #tpu.memory_space<vmem>>, vector<8x128xf32>
    tpu.vector_store %arg9[%c0_32, %c0_33], %37 {strides = array<i32>} : memref<8x128xf32, #tpu.memory_space<vmem>>, vector<8x128xf32>,
    %39 = vector.extract_strided_slice %36 {offsets = [0, 128], sizes = [8, 128], strides = [1, 1]} : vector<8x256xf32> to vector<8x128xf32>
    %cst_34 = arith.constant -2.000000e+01 : f32
    %cst_35 = arith.constant 2.000000e+00 : f32
    %40 = vector.broadcast %cst_34 : f32 to vector<8x128xf32>
    %41 = arith.maximumf %40, %39 : vector<8x128xf32>
    %42 = vector.broadcast %cst_35 : f32 to vector<8x128xf32>
    %43 = arith.minimumf %42, %41 : vector<8x128xf32>
    %c0_36 = arith.constant 0 : index
    %c0_37 = arith.constant 0 : index
    %44 = vector.load %arg10[%c0_36, %c0_37] : memref<8x128xf32, #tpu.memory_space<vmem>>, vector<8x128xf32>
    tpu.vector_store %arg10[%c0_36, %c0_37], %43 {strides = array<i32>} : memref<8x128xf32, #tpu.memory_space<vmem>>, vector<8x128xf32>,
    return
  }
  func.func @transform_0(%arg0: i32) -> (i32, i32) {
    %c0_i32 = arith.constant 0 : i32
    %c0_i32_0 = arith.constant 0 : i32
    return %arg0, %c0_i32 : i32, i32
  }
  func.func @transform_1(%arg0: i32) -> (i32, i32, i32) {
    %c0_i32 = arith.constant 0 : i32
    %c0_i32_0 = arith.constant 0 : i32
    %c0_i32_1 = arith.constant 0 : i32
    return %c0_i32, %arg0, %c0_i32_0 : i32, i32, i32
  }
  func.func @transform_2(%arg0: i32) -> (i32, i32) {
    %c0_i32 = arith.constant 0 : i32
    %c0_i32_0 = arith.constant 0 : i32
    %c0_i32_1 = arith.constant 0 : i32
    return %c0_i32, %c0_i32_0 : i32, i32
  }
  func.func @transform_3(%arg0: i32) -> (i32, i32) {
    %c0_i32 = arith.constant 0 : i32
    %c0_i32_0 = arith.constant 0 : i32
    %c0_i32_1 = arith.constant 0 : i32
    return %c0_i32, %c0_i32_0 : i32, i32
  }
  func.func @transform_4(%arg0: i32) -> (i32, i32, i32) {
    %c0_i32 = arith.constant 0 : i32
    %c0_i32_0 = arith.constant 0 : i32
    %c0_i32_1 = arith.constant 0 : i32
    %c0_i32_2 = arith.constant 0 : i32
    return %c0_i32, %c0_i32_0, %c0_i32_1 : i32, i32, i32
  }
  func.func @transform_5(%arg0: i32) -> (i32, i32, i32) {
    %c0_i32 = arith.constant 0 : i32
    %c0_i32_0 = arith.constant 0 : i32
    %c0_i32_1 = arith.constant 0 : i32
    %c0_i32_2 = arith.constant 0 : i32
    return %c0_i32, %c0_i32_0, %c0_i32_1 : i32, i32, i32
  }
  func.func @transform_6(%arg0: i32) -> (i32, i32) {
    %c0_i32 = arith.constant 0 : i32
    %c0_i32_0 = arith.constant 0 : i32
    %c0_i32_1 = arith.constant 0 : i32
    return %c0_i32, %c0_i32_0 : i32, i32
  }
  func.func @transform_7(%arg0: i32) -> (i32, i32) {
    %c0_i32 = arith.constant 0 : i32
    %c0_i32_0 = arith.constant 0 : i32
    %c0_i32_1 = arith.constant 0 : i32
    return %c0_i32, %c0_i32_0 : i32, i32
  }
  func.func @transform_8(%arg0: i32) -> (i32, i32) {
    %c0_i32 = arith.constant 0 : i32
    %c0_i32_0 = arith.constant 0 : i32
    return %arg0, %c0_i32 : i32, i32
  }
  func.func @transform_9(%arg0: i32) -> (i32, i32) {
    %c0_i32 = arith.constant 0 : i32
    %c0_i32_0 = arith.constant 0 : i32
    return %arg0, %c0_i32 : i32, i32
  }
}

</mosaic_0001>

<bundles_post_ra>
// kernel: tpu_custom_call.1
= control target key start
LH: loop header
LB: loop body
LE: loop exit
PB: predicated region body
PF: predicated region fallthrough
CT: control target
= control target key end

     0   :  { %15 = vsyncpa [#allocation3], 0  ;;  %s914_s0 = inlined_call_operand.hbm [shape: f32[8,16], index: 0, kind: input, shape index: {}]   ;;  %s915_s1 = inlined_call_operand.hbm [shape: f32[2,8,32], index: 1, kind: input, shape index: {}]   ;;  %s916_s2 = inlined_call_operand.hbm [shape: f32[16,32], index: 2, kind: input, shape index: {}]   ;;  %s917_s3 = inlined_call_operand.vmem [shape: f32[1,32], index: 3, kind: input, shape index: {}]   ;;  %s918_s4 = inlined_call_operand.hbm [shape: f32[2,32,32], index: 4, kind: input, shape index: {}]   ;;  %s919_s5 = inlined_call_operand.vmem [shape: f32[2,1,32], index: 5, kind: input, shape index: {}]   ;;  %s920_s6 = inlined_call_operand.hbm [shape: f32[32,256], index: 6, kind: input, shape index: {}]   ;;  %s921_s7 = inlined_call_operand.vmem [shape: f32[1,256], index: 7, kind: input, shape index: {}]   ;;  %s922_s8 = inlined_call_operand.hbm [shape: f32[8,128], index: 8, kind: output, shape index: {0}]   ;;  %s923_s9 = inlined_call_operand.hbm [shape: f32[8,128], index: 9, kind: output, shape index: {1}]  }
   0x1   :  { %16 = vsyncpa [#allocation6], 0 }
   0x2   :  { %17 = vsyncpa [#allocation9], 0 }
   0x3   :  { %18 = vsyncpa [#allocation4], 0 }
   0x4   :  { %19 = vsyncpa [#allocation13], 0  ;;  %s742_s30 = smov [#allocation5]   ;;  %s578_s13 = scalar_lea.hbm %s915_s1, 256 }
   0x5   :  { %s35_s10 = sshll.u32 %s742_s30, 4  ;;  %p579_p0 = scmp.ne.s32.totalorder %s915_s1, %s578_s13  ;;  %s36_s10 = int_to_ptr.vmem [resolvable:$true] %s35_s10 }
   0x6   :  { %p582_p1 = scmp.lt.u32.totalorder %s578_s13, %s915_s1 }
   0x8   :  { %p584_p2 = pnand %p582_p1, %p579_p0 }
   0xa   :  { %587 = shalt.err (!%p584_p2)
}
   0xb   :  { %s588_s18 = scalar_lea.vmem %s36_s10, 256  ;;  %p593_p4 = scmp.lt.s32.totalorder %s36_s10, %s36_s10 }
   0xc   :  { %p589_p3 = scmp.ne.s32.totalorder %s36_s10, %s588_s18  ;;  %p594_p5 = scmp.lt.s32.totalorder %s588_s18, %s588_s18 }
   0xe   :  { %p595_p6 = por %p594_p5, %p593_p4 }
  0x10   :  { %p596_p7 = pnand %p595_p6, %p589_p3 }
  0x12   :  { %599 = shalt.err (!%p596_p7)
}
  0x13   :  { %s743_s19 = smov 128   ;;  %s744_s20 = smov 8  }
  0x14   :  { %41 = dma.hbm_to_vmem [thread:$0]  %s915_s1, 256, %s36_s10, [#allocation6], %s743_s19, %s743_s19, %s744_s20  }
  0x15   :  { %s745_s23 = smov [#allocation8]   ;;  %s746_s25 = smov [#allocation2]  }
  0x16   :  { %s61_s24 = sshll.u32 %s745_s23, 4  ;;  %s26_s26 = sshll.u32 %s746_s25, 4  ;;  %s62_s24 = int_to_ptr.vmem [resolvable:$true] %s61_s24  ;;  %s27_s26 = int_to_ptr.vmem [resolvable:$true] %s26_s26 }
  0x17   :  { %s600_s29 = scalar_lea.hbm %s918_s4, 1024 }
  0x18   :  { %p601_p8 = scmp.ne.s32.totalorder %s918_s4, %s600_s29  ;;  %p604_p9 = scmp.lt.u32.totalorder %s600_s29, %s918_s4 }
  0x1a   :  { %p606_p10 = pnand %p604_p9, %p601_p8 }
  0x1c   :  { %609 = shalt.err (!%p606_p10)
}
  0x1d   :  { %s610_s1 = scalar_lea.vmem %s62_s24, 1024  ;;  %p615_p12 = scmp.lt.s32.totalorder %s62_s24, %s62_s24 }
  0x1e   :  { %p611_p11 = scmp.ne.s32.totalorder %s62_s24, %s610_s1  ;;  %p616_p13 = scmp.lt.s32.totalorder %s610_s1, %s610_s1 }
  0x20   :  { %p617_p0 = por %p616_p13, %p615_p12 }
  0x22   :  { %p618_p1 = pnand %p617_p0, %p611_p11 }
  0x24   :  { %621 = shalt.err (!%p618_p1)
}
  0x25   :  { %67 = dma.hbm_to_vmem [thread:$0]  %s918_s4, 1024, %s62_s24, [#allocation9], %s743_s19, %s743_s19, %s744_s20  }
  0x26   :  { %s622_s17 = scalar_lea.hbm %s914_s0, 128 }
  0x27   :  { %p623_p2 = scmp.ne.s32.totalorder %s914_s0, %s622_s17  ;;  %p626_p3 = scmp.lt.u32.totalorder %s622_s17, %s914_s0 }
  0x29   :  { %p628_p4 = pnand %p626_p3, %p623_p2 }
  0x2b   :  { %631 = shalt.err (!%p628_p4)
}
  0x2c   :  { %s632_s25 = scalar_lea.vmem %s27_s26, 128  ;;  %p637_p6 = scmp.lt.s32.totalorder %s27_s26, %s27_s26 }
  0x2d   :  { %p633_p5 = scmp.ne.s32.totalorder %s27_s26, %s632_s25  ;;  %p638_p7 = scmp.lt.s32.totalorder %s632_s25, %s632_s25 }
  0x2f   :  { %p639_p8 = por %p638_p7, %p637_p6 }
  0x31   :  { %p640_p9 = pnand %p639_p8, %p633_p5 }
  0x33   :  { %643 = shalt.err (!%p640_p9)
}
  0x34   :  { %29 = dma.hbm_to_vmem [thread:$0]  %s914_s0, 128, %s27_s26, [#allocation3]  }
  0x35   :  { %s747_s27 = smov [#allocation7]   ;;  %s748_s29 = smov [#allocation10]  }
  0x36   :  { %s47_s28 = sshll.u32 %s747_s27, 4  ;;  %s75_s30 = sshll.u32 %s748_s29, 4  ;;  %s48_s28 = int_to_ptr.vmem [resolvable:$true] %s47_s28  ;;  %s76_s30 = int_to_ptr.vmem [resolvable:$true] %s75_s30 }
  0x37   :  { %s644_s13 = scalar_lea.hbm %s916_s2, 256 }
  0x38   :  { %p645_p10 = scmp.ne.s32.totalorder %s916_s2, %s644_s13  ;;  %p648_p11 = scmp.lt.u32.totalorder %s644_s13, %s916_s2 }
  0x3a   :  { %p650_p12 = pnand %p648_p11, %p645_p10 }
  0x3c   :  { %653 = shalt.err (!%p650_p12)
}
  0x3d   :  { %s654_s0 = scalar_lea.vmem %s48_s28, 256  ;;  %p659_p0 = scmp.lt.s32.totalorder %s48_s28, %s48_s28 }
  0x3e   :  { %p655_p13 = scmp.ne.s32.totalorder %s48_s28, %s654_s0  ;;  %p660_p1 = scmp.lt.s32.totalorder %s654_s0, %s654_s0 }
  0x40   :  { %p661_p2 = por %p660_p1, %p659_p0 }
  0x42   :  { %p662_p3 = pnand %p661_p2, %p655_p13 }
  0x44   :  { %665 = shalt.err (!%p662_p3)
}
  0x45   :  { %53 = dma.hbm_to_vmem [thread:$0]  %s916_s2, 256, %s48_s28, [#allocation6], %s743_s19, %s743_s19, %s744_s20  }
  0x46   :  { %s666_s21 = scalar_lea.hbm %s920_s6, 1024 }
  0x47   :  { %p667_p4 = scmp.ne.s32.totalorder %s920_s6, %s666_s21  ;;  %p670_p5 = scmp.lt.u32.totalorder %s666_s21, %s920_s6 }
  0x49   :  { %p672_p6 = pnand %p670_p5, %p667_p4 }
  0x4b   :  { %675 = shalt.err (!%p672_p6)
}
  0x4c   :  { %s676_s24 = scalar_lea.vmem %s76_s30, 1024  ;;  %p681_p8 = scmp.lt.s32.totalorder %s76_s30, %s76_s30 }
  0x4d   :  { %p677_p7 = scmp.ne.s32.totalorder %s76_s30, %s676_s24  ;;  %p682_p9 = scmp.lt.s32.totalorder %s676_s24, %s676_s24 }
  0x4f   :  { %p683_p10 = por %p682_p9, %p681_p8 }
  0x51   :  { %p684_p11 = pnand %p683_p10, %p677_p7 }
  0x53   :  { %687 = shalt.err (!%p684_p11)
}
  0x54   :  { %s749_s2 = smov 256   ;;  %s750_s19 = smov 16  }
  0x55   :  { %81 = dma.hbm_to_vmem [thread:$0]  %s920_s6, 1024, %s76_s30, [#allocation9], %s749_s2, %s749_s2, %s750_s19  }
  0x56   :  { %732 = dma.done.wait [#allocation3], 128  }
  0x57   :  { %733 = vsyncadd [#allocation3], 4294967168 }
  0x58   :  { %734 = dma.done.wait [#allocation6], 512  }
  0x59   :  { %735 = vsyncadd [#allocation6], 4294966784 }
  0x5a   :  { %736 = dma.done.wait [#allocation9], 2048  }
  0x5b   :  { %737 = vsyncadd [#allocation9], 4294965248  ;;  %v751_v0 = vmov 0.0|0.0   ;;  %vm752_vm0 = vmmov 0   ;;  %v753_v1 = vmov 0.0   ;;  %v100_v2 = vld [vmem:[#allocation7] sm:$0xff]  ;;  %v372_v49 = vlaneseq }
  0x5c   :  { %541 = vmatprep.subr.bf16.mxu0 %v751_v0  ;;  %516 = vmatprep.mubr.msk.f32.mxu0 %vm752_vm0, %v753_v1  ;;  %v101_v3 = vld [vmem:[#allocation7 + $0x8] sm:$0xff]  ;;  %vm109_vm1 = vcmask 130048   ;;  %v186_v6 = vld [vmem:[#allocation8] sm:$0xff]  ;;  %v187_v7 = vld [vmem:[#allocation8 + $0x8] sm:$0xff]  ;;  %vm197_vm2 = vcmask 261120   ;;  %s754_s1 = smov [#allocation11]  }
  0x5d   :  { %544 = vmatprep.subr.bf16.mxu1 %v751_v0  ;;  %527 = vmatprep.mubr.msk.f32.mxu1 %vm752_vm0, %v753_v1  ;;  %v542_v4 = vpack.c.bf16 %v101_v3, %v100_v2  ;;  %v99_v5 = vld [vmem:[#allocation2] sm:$0xff]  ;;  %v545_v8 = vpack.c.bf16 %v187_v7, %v186_v6  ;;  %v188_v9 = vld [vmem:[#allocation8 + $0x10] sm:$0xff]  ;;  %v183_v14 = vld [vmem:[#allocation5] sm:$0xff]  ;;  %v373_v50 = vshrl.u32 %v372_v49, 7  ;;  %s466_s10 = sshll.u32 %s754_s1, 4  ;;  %s467_s10 = int_to_ptr.vmem [resolvable:$true] %s466_s10 }
  0x5e   :  { %v189_v10 = vld [vmem:[#allocation8 + $0x18] sm:$0xff]  ;;  %v276_v19 = vld [vmem:[#allocation8 + $0x20] sm:$0xff]  ;;  %v277_v20 = vld [vmem:[#allocation8 + $0x28] sm:$0xff]  ;;  %s688_s15 = scalar_lea.vmem %s467_s10, 128  ;;  %p693_p13 = scmp.lt.s32.totalorder %s467_s10, %s467_s10 }
  0x5f   :  { %543 = vmatpush3.bf16.msra.mxu0 %v542_v4  ;;  %546 = vmatpush3.bf16.msra.mxu1 %v545_v8  ;;  %v548_v11 = vpack.c.bf16 %v189_v10, %v188_v9  ;;  %v491_v12 = vld [vmem:[%s917_s3] ss:$0 sm:$0xff]  ;;  %v551_v21 = vpack.c.bf16 %v277_v20, %v276_v19  ;;  %v278_v22 = vld [vmem:[#allocation8 + $0x30] sm:$0xff]  ;;  %v363_v25 = vld [vmem:[#allocation10 + $0x8] sm:$0xff]  ;;  %v374_v51 = vsub.s32 0, %v373_v50  ;;  %v378_v53 = vsub.s32 1, %v373_v50  ;;  %p689_p12 = scmp.ne.s32.totalorder %s467_s10, %s688_s15  ;;  %p694_p0 = scmp.lt.s32.totalorder %s688_s15, %s688_s15 }
  0x60   :  { %550 = vmatprep.subr.bf16.mxu0 %v751_v0  ;;  %547 = vmatprep.subr.bf16.mxu1 %v751_v0  ;;  %v279_v23 = vld [vmem:[#allocation8 + $0x38] sm:$0xff]  ;;  %v362_v27 = vld [vmem:[#allocation10] sm:$0xff]  ;;  %v364_v29 = vld [vmem:[#allocation10 + $0x10] sm:$0xff] }
  0x61   :  { %v554_v24 = vpack.c.bf16 %v279_v23, %v278_v22  ;;  %v365_v26 = vld [vmem:[#allocation10 + $0x18] sm:$0xff]  ;;  %v558_v30 = vpack.c.bf16 %v364_v29, %v362_v27  ;;  %v272_v33 = vld [vmem:[#allocation5 + $0x8] sm:$0xff]  ;;  %v366_v41 = vld [vmem:[#allocation10 + $0x20] sm:$0xff]  ;;  %p695_p1 = por %p694_p0, %p693_p13 }
  0x62   :  { %517 = vmatmul.mubr.msk.f32.vlgmr.msra.gmra.mrb[0].mxu0 %vm109_vm1, %v99_v5  ;;  %v556_v28 = vpack.c.bf16 %v365_v26, %v363_v25  ;;  %v493_v31 = vld [vmem:[%s919_s5] ss:$0 sm:$0xff]  ;;  %v367_v38 = vld [vmem:[#allocation10 + $0x28] sm:$0xff]  ;;  %v368_v42 = vld [vmem:[#allocation10 + $0x30] sm:$0xff] }
  0x63   :  { %538 = vmatprep.mubr.msk.f32.mxu0 %vm752_vm0, %v753_v1  ;;  %549 = vmatpush3.bf16.msra.mxu1 %v548_v11  ;;  %v369_v39 = vld [vmem:[#allocation10 + $0x38] sm:$0xff]  ;;  %v562_v43 = vpack.c.bf16 %v368_v42, %v366_v41  ;;  %p696_p2 = pnand %p695_p1, %p689_p12 }
  0x64   :  { %552 = vmatpush3.bf16.msra.mxu0 %v551_v21  ;;  %557 = vmatprep.subr.bf16.mxu1 %v556_v28  ;;  %v560_v40 = vpack.c.bf16 %v369_v39, %v367_v38  ;;  %v496_v44 = vld [vmem:[%s919_s5 + $0x1] ss:$0 sm:$0xff]  ;;  %s755_s5 = smov [#allocation12]  }
  0x65   :  { %553 = vmatprep.subr.bf16.mxu0 %v751_v0  ;;  %v370_v52 = vld [vmem:[%s921_s7] sm:$0x3]  ;;  %s476_s14 = sshll.u32 %s755_s5, 4  ;;  %s477_s14 = int_to_ptr.vmem [resolvable:$true] %s476_s14 }
  0x66   :  { %v375_v54 = vrot.slane %v370_v52, %v374_v51  ;;  %v379_v55 = vrot.slane %v370_v52, %v378_v53 }
  0x68   :  { %555 = vmatpush3.bf16.msra.mxu0 %v554_v24 }
 0x135   :  { %v179_v13 = vpop.f32.mrb[0].mxu0 }
 0x136   :  { %v180_v15 = vadd.f32 %v491_v12, %v179_v13  ;;  %v518_v16 = vpop.f32.mrb[1].mxu0 }
 0x138   :  { %v184_v17 = vmul.f32 %v183_v14, %v180_v15 }
 0x13a   :  { %v185_v18 = vmax.f32 %v184_v17, 0.0 }
 0x13c   :  { %528 = vmatmul.mubr.msk.f32.vlgmr.msra.gmra.mrb[0].mxu1 %vm197_vm2, %v185_v18 }
 0x13d   :  { %449 = vmatprep.mubr.f32.mxu1 %v753_v1  ;;  %559 = vmatpush1.bf16.msra.mxu1 %v558_v30 }
 0x13e   :  { %561 = vmatprep.subr.bf16.mxu1 %v560_v40 }
 0x141   :  { %563 = vmatpush1.bf16.msra.mxu1 %v562_v43 }
 0x20f   :  { %v267_v32 = vpop.f32.mrb[0].mxu1 }
 0x210   :  { %v268_v34 = vadd.f32 %v493_v31, %v267_v32  ;;  %v529_v35 = vpop.f32.mrb[1].mxu1 }
 0x212   :  { %v273_v36 = vmul.f32 %v272_v33, %v268_v34 }
 0x214   :  { %v274_v37 = vmax.f32 %v273_v36, 0.0 }
 0x216   :  { %539 = vmatmul.mubr.msk.f32.vlgmr.msra.gmra.mrb[2].mxu0 %vm197_vm2, %v274_v37 }
 0x2e9   :  { %v357_v45 = vpop.f32.mrb[2].mxu0 }
 0x2ea   :  { %v358_v46 = vadd.f32 %v496_v44, %v357_v45  ;;  %v540_v47 = vpop.f32.mrb[3].mxu0 }
 0x2ec   :  { %v361_v48 = vmax.f32 %v358_v46, 0.0 }
 0x2ee   :  { %498 = vmatmul.mubr.msk.f32.vlgmr.msra.gmra.mrb[2].mxu1 %vm197_vm2, %v361_v48 }
 0x3c1   :  { %v451_v56 = vpop.f32.mrb[2].mxu1 }
 0x3c2   :  { %v452_v57 = vadd.f32 %v451_v56, %v375_v54  ;;  %v453_v58 = vpop.f32.mrb[3].mxu1 }
 0x3c3   :  { %v454_v59 = vadd.f32 %v453_v58, %v379_v55 }
 0x3c4   :  { %456 = vst [vmem:[#allocation11] sm:$0xff] %v452_v57 }
 0x3c5   :  { %v457_v60 = vmax.f32 %v454_v59, -20.0 }
 0x3c6   :  { %699 = shalt.err (!%p696_p2)
}
 0x3c7   :  { %s700_s26 = scalar_lea.hbm %s922_s8, 128 }
 0x3c8   :  { %p701_p3 = scmp.ne.s32.totalorder %s922_s8, %s700_s26  ;;  %p704_p4 = scmp.lt.u32.totalorder %s700_s26, %s922_s8 }
 0x3ca   :  { %p706_p5 = pnand %p704_p4, %p701_p3 }
 0x3cc   :  { %709 = shalt.err (!%p706_p5)
}
 0x3cd   :  { %469 = dma.vmem_to_hbm [thread:$0]  %s467_s10, 128, %s922_s8, [#allocation4]   ;;  %v458_v61 = vmin.f32 %v457_v60, 2.0 }
 0x3ce   :  { %s710_s25 = scalar_lea.vmem %s477_s14, 128  ;;  %p715_p7 = scmp.lt.s32.totalorder %s477_s14, %s477_s14 }
 0x3cf   :  { %459 = vst [vmem:[#allocation12] sm:$0xff] %v458_v61  ;;  %p711_p6 = scmp.ne.s32.totalorder %s477_s14, %s710_s25  ;;  %p716_p8 = scmp.lt.s32.totalorder %s710_s25, %s710_s25 }
 0x3d1   :  { %p717_p9 = por %p716_p8, %p715_p7 }
 0x3d3   :  { %p718_p10 = pnand %p717_p9, %p711_p6 }
 0x3d5   :  { %721 = shalt.err (!%p718_p10)
}
 0x3d6   :  { %s722_s2 = scalar_lea.hbm %s923_s9, 128 }
 0x3d7   :  { %p723_p11 = scmp.ne.s32.totalorder %s923_s9, %s722_s2  ;;  %p726_p12 = scmp.lt.u32.totalorder %s722_s2, %s923_s9 }
 0x3d9   :  { %p728_p13 = pnand %p726_p12, %p723_p11 }
 0x3db   :  { %731 = shalt.err (!%p728_p13)
}
 0x3dc   :  { %479 = dma.vmem_to_hbm [thread:$0]  %s477_s14, 128, %s923_s9, [#allocation13]  }
 0x3dd   :  { %738 = dma.done.wait [#allocation4], 128  }
 0x3de   :  { %739 = vsyncadd [#allocation4], 4294967168 }
 0x3df   :  { %740 = dma.done.wait [#allocation13], 128  }
 0x3e0   :  { %741 = vsyncadd [#allocation13], 4294967168 }
 0x3e1   :  { %486 = vsyncpa [#allocation3], 1 }
 0x3e2   :  { %487 = vsyncpa [#allocation6], 1 }
 0x3e3   :  { %488 = vsyncpa [#allocation9], 1 }
 0x3e4   :  { %489 = vsyncpa [#allocation4], 1 }
 0x3e5   :  { %490 = vsyncpa [#allocation13], 1 }

</bundles_post_ra>
